<compile_context>
chip_gen: v6e
topology: v6e:2x2x1
jax: 0.10.0
libtpu: 0.0.40
codegen_flags: <defaults>
</compile_context>

<pallas_src>
import functools

import jax
import jax.numpy as jnp
import numpy as np
from jax import lax
from jax.experimental import pallas as pl
from jax.experimental.pallas import tpu as pltpu

NEG_INF = -1e30  # same constant as squad masked_softmax


def _output_layer_kernel(m0_ref, m1_ref, m2_ref, mask_ref, wa_ref, wb_ref,
                         logp1_ref, logp2_ref, *, tb):
    # Block shapes (per grid step):
    #   m0/m1/m2 : (TB, L, D)  bf16
    #   mask     : (TB, 1, L)  f32
    #   wa/wb    : (1, D)      bf16   (start_span_linear weight halves)
    #   outputs  : (TB, 1, L)  f32
    wa = wa_ref[...]
    wb = wb_ref[...]
    # Contract the feature dim: (1, D) x (L, D) -> (1, L)  (lane axis = L).
    dn = (((1,), (1,)), ((), ()))

    start_rows = []
    end_rows = []
    for t in range(tb):  # short static unroll over the rows in this block
        m0t = m0_ref[t]                 # (L, D)
        m1t = m1_ref[t]
        m2t = m2_ref[t]
        keep = mask_ref[t] > 0.0        # (1, L) bool

        # s0 is shared between the start and end logits (CSE made explicit).
        s0 = lax.dot_general(wa, m0t, dn, preferred_element_type=jnp.float32)
        s1 = lax.dot_general(wb, m1t, dn, preferred_element_type=jnp.float32)
        s2 = lax.dot_general(wb, m2t, dn, preferred_element_type=jnp.float32)

        start_rows.append(jnp.where(keep, s0 + s1, NEG_INF))
        end_rows.append(jnp.where(keep, s0 + s2, NEG_INF))

    # One masked log-softmax over all 2*TB rows (reductions along lanes).
    logits = jnp.concatenate(start_rows + end_rows, axis=0)     # (2*TB, L) f32
    mmax = jnp.max(logits, axis=-1, keepdims=True)
    z = logits - mmax
    lse = jnp.log(jnp.sum(jnp.exp(z), axis=-1, keepdims=True))
    lp = z - lse

    for t in range(tb):
        logp1_ref[t] = lp[t:t + 1, :]
        logp2_ref[t] = lp[tb + t:tb + t + 1, :]


def _pick_tb(batch, seq, feat, itemsize):
    """Largest divisor of `batch` whose double-buffered M-blocks fit VMEM."""
    budget = 24 * 1024 * 1024                  # v7x-safe double-buffer budget
    per_row = 2 * 3 * seq * feat * itemsize    # 2 pipeline bufs x (M0, M1, M2)
    cap = max(1, budget // max(per_row, 1))
    cap = min(int(cap), 16)
    if batch >= 2:
        # Keep the (parallel) grid length >= 2 so both v7x TensorCores work.
        cap = min(cap, max(1, batch // 2))
    tb = 1
    for cand in range(1, cap + 1):
        if batch % cand == 0:
            tb = cand
    return tb


def output_layer_forward(model_encoder_outputs, mask, w_start, w_end,
                         compute_dtype=jnp.bfloat16):
    """Pallas implementation of OutputLayer.forward.

    model_encoder_outputs: (M0, M1, M2), each [B, L, 4*hidden] float32
    mask:                  [B, L] (0/1)
    w_start, w_end:        [1, 8*hidden]  (end weight is unused, as in the
                           reference forward)
    returns (log_p1, log_p2), each [B, L] float32
    """
    m0, m1, m2 = model_encoder_outputs
    B, L, D = m0.shape
    del w_end  # created by __init__ but never used by the reference forward

    itemsize = jnp.dtype(compute_dtype).itemsize
    tb = _pick_tb(B, L, D, itemsize)
    grid = (B // tb,)

    # Halve HBM traffic: stream activations + weights in bf16; accumulate f32.
    m0c = m0.astype(compute_dtype)
    m1c = m1.astype(compute_dtype)
    m2c = m2.astype(compute_dtype)
    # Pre-split the weight so the kernel never slices across lane tiles.
    wa = w_start[:, :D].astype(compute_dtype)   # (1, D) applied to M0
    wb = w_start[:, D:].astype(compute_dtype)   # (1, D) applied to M1 / M2
    mask3 = mask.astype(jnp.float32).reshape(B, 1, L)

    out_shape = (jax.ShapeDtypeStruct((B, 1, L), jnp.float32),
                 jax.ShapeDtypeStruct((B, 1, L), jnp.float32))

    grid_spec = pltpu.PrefetchScalarGridSpec(
        num_scalar_prefetch=0,
        grid=grid,                                          # B // TB steps
        in_specs=[
            pl.BlockSpec((tb, L, D), lambda b: (b, 0, 0)),  # M0
            pl.BlockSpec((tb, L, D), lambda b: (b, 0, 0)),  # M1
            pl.BlockSpec((tb, L, D), lambda b: (b, 0, 0)),  # M2
            pl.BlockSpec((tb, 1, L), lambda b: (b, 0, 0)),  # mask
            pl.BlockSpec((1, D), lambda b: (0, 0)),         # wa (shared)
            pl.BlockSpec((1, D), lambda b: (0, 0)),         # wb (shared)
        ],
        out_specs=[
            pl.BlockSpec((tb, 1, L), lambda b: (b, 0, 0)),  # log_p1
            pl.BlockSpec((tb, 1, L), lambda b: (b, 0, 0)),  # log_p2
        ],
    )

    cost = pl.CostEstimate(
        flops=6 * B * L * D,
        transcendentals=2 * B * L,
        bytes_accessed=(3 * B * L * D * itemsize      # M0/M1/M2 reads
                        + B * L * 4                   # mask read
                        + 2 * B * L * 4               # log_p1/log_p2 writes
                        + 2 * 2 * D * itemsize),      # weights
    )

    log_p1, log_p2 = pl.pallas_call(
        functools.partial(_output_layer_kernel, tb=tb),
        out_shape=out_shape,
        grid_spec=grid_spec,
        compiler_params=pltpu.CompilerParams(
            dimension_semantics=("parallel",),
            vmem_limit_bytes=48 * 1024 * 1024,   # > 16/32 MiB scoped defaults,
        ),                                       #   < 64 MiB v7x physical
        cost_estimate=cost,
    )(m0c, m1c, m2c, mask3, wa, wb)

    return log_p1.reshape(B, L), log_p2.reshape(B, L)


def reference_forward(model_encoder_outputs, mask, w_start,
                      compute_dtype=jnp.float32):
    """Pure-JAX reference mirroring the PyTorch forward."""
    m0, m1, m2 = (x.astype(compute_dtype) for x in model_encoder_outputs)
    D = m0.shape[-1]
    w = w_start.astype(compute_dtype)
    wa, wb = w[0, :D], w[0, D:]
    s0 = jnp.einsum("bld,d->bl", m0, wa, preferred_element_type=jnp.float32)
    s1 = jnp.einsum("bld,d->bl", m1, wb, preferred_element_type=jnp.float32)
    s2 = jnp.einsum("bld,d->bl", m2, wb, preferred_element_type=jnp.float32)
    keep = mask > 0

    def msm(x):
        return jax.nn.log_softmax(jnp.where(keep, x, NEG_INF), axis=-1)

    return msm(s0 + s1), msm(s0 + s2)


if __name__ == "__main__":
    key = jax.random.PRNGKey(0)
    hidden_size = 8
    B, L = 4, 16
    D = 4 * hidden_size          # each model-encoder output has 4*hidden features

    k0, k1, k2, k3, k4 = jax.random.split(key, 5)
    m0 = jax.random.normal(k0, (B, L, D), jnp.float32)
    m1 = jax.random.normal(k1, (B, L, D), jnp.float32)
    m2 = jax.random.normal(k2, (B, L, D), jnp.float32)

    lengths = jnp.array([L, 10, 13, 7])
    mask = (jnp.arange(L)[None, :] < lengths[:, None]).astype(jnp.float32)

    # Deterministic Linear(8*hidden, 1, bias=False) weights (kaiming-uniform-ish).
    bound = 1.0 / np.sqrt(2 * D)
    w_start = jax.random.uniform(k3, (1, 2 * D), jnp.float32, -bound, bound)
    w_end = jax.random.uniform(k4, (1, 2 * D), jnp.float32, -bound, bound)

    log_p1, log_p2 = output_layer_forward((m0, m1, m2), mask, w_start, w_end)
    jax.block_until_ready((log_p1, log_p2))

    # Tight check vs a precision-matched reference (bf16 matvec, f32 softmax).
    ref1_bf, ref2_bf = reference_forward((m0, m1, m2), mask, w_start,
                                         compute_dtype=jnp.bfloat16)
    np.testing.assert_allclose(np.asarray(log_p1), np.asarray(ref1_bf),
                               rtol=1e-3, atol=1e-3)
    np.testing.assert_allclose(np.asarray(log_p2), np.asarray(ref2_bf),
                               rtol=1e-3, atol=1e-3)

    # Loose sanity check vs the full-f32 PyTorch-equivalent reference
    # (bf16 activation streaming costs a few logit mantissa bits).
    ref1, ref2 = reference_forward((m0, m1, m2), mask, w_start)
    np.testing.assert_allclose(np.asarray(log_p1), np.asarray(ref1),
                               rtol=5e-2, atol=5e-2)
    np.testing.assert_allclose(np.asarray(log_p2), np.asarray(ref2),
                               rtol=5e-2, atol=5e-2)
    print("KERNEL_OK")
</pallas_src>

<mosaic_0001>
module attributes {stable_mosaic.version = 11 : i64} {
  func.func @_output_layer_kernel(%arg0: i32, %arg1: memref<2x16x32xbf16, #tpu.memory_space<vmem>>, %arg2: memref<2x16x32xbf16, #tpu.memory_space<vmem>>, %arg3: memref<2x16x32xbf16, #tpu.memory_space<vmem>>, %arg4: memref<2x1x16xf32, #tpu.memory_space<vmem>>, %arg5: memref<1x32xbf16, #tpu.memory_space<vmem>>, %arg6: memref<1x32xbf16, #tpu.memory_space<vmem>>, %arg7: memref<2x1x16xf32, #tpu.memory_space<vmem>>, %arg8: memref<2x1x16xf32, #tpu.memory_space<vmem>>) attributes {dimension_semantics = [#tpu.dimension_semantics<parallel>], iteration_bounds = array<i64: 2>, scalar_prefetch = 0 : i64, scratch_operands = 0 : i64, tpu.core_type = #tpu.core_type<tc>, window_params = [{transform_indices = @transform_0, window_bounds = array<i64: 2, 16, 32>}, {transform_indices = @transform_1, window_bounds = array<i64: 2, 16, 32>}, {transform_indices = @transform_2, window_bounds = array<i64: 2, 16, 32>}, {transform_indices = @transform_3, window_bounds = array<i64: 2, 1, 16>}, {pipeline_mode = #tpu.pipeline_mode<synchronous>, transform_indices = @transform_4, window_bounds = array<i64: 1, 32>}, {pipeline_mode = #tpu.pipeline_mode<synchronous>, transform_indices = @transform_5, window_bounds = array<i64: 1, 32>}, {transform_indices = @transform_6, window_bounds = array<i64: 2, 1, 16>}, {transform_indices = @transform_7, window_bounds = array<i64: 2, 1, 16>}]} {
    %c0 = arith.constant 0 : index
    %c0_0 = arith.constant 0 : index
    %0 = vector.load %arg5[%c0, %c0_0] : memref<1x32xbf16, #tpu.memory_space<vmem>>, vector<1x32xbf16>
    %c0_1 = arith.constant 0 : index
    %c0_2 = arith.constant 0 : index
    %1 = vector.load %arg6[%c0_1, %c0_2] : memref<1x32xbf16, #tpu.memory_space<vmem>>, vector<1x32xbf16>
    %c0_3 = arith.constant 0 : index
    %c0_4 = arith.constant 0 : index
    %c0_5 = arith.constant 0 : index
    %2 = vector.load %arg1[%c0_3, %c0_4, %c0_5] : memref<2x16x32xbf16, #tpu.memory_space<vmem>>, vector<1x16x32xbf16>
    %3 = vector.shape_cast %2 : vector<1x16x32xbf16> to vector<16x32xbf16>
    %c0_6 = arith.constant 0 : index
    %c0_7 = arith.constant 0 : index
    %c0_8 = arith.constant 0 : index
    %4 = vector.load %arg2[%c0_6, %c0_7, %c0_8] : memref<2x16x32xbf16, #tpu.memory_space<vmem>>, vector<1x16x32xbf16>
    %5 = vector.shape_cast %4 : vector<1x16x32xbf16> to vector<16x32xbf16>
    %c0_9 = arith.constant 0 : index
    %c0_10 = arith.constant 0 : index
    %c0_11 = arith.constant 0 : index
    %6 = vector.load %arg3[%c0_9, %c0_10, %c0_11] : memref<2x16x32xbf16, #tpu.memory_space<vmem>>, vector<1x16x32xbf16>
    %7 = vector.shape_cast %6 : vector<1x16x32xbf16> to vector<16x32xbf16>
    %c0_12 = arith.constant 0 : index
    %c0_13 = arith.constant 0 : index
    %c0_14 = arith.constant 0 : index
    %8 = vector.load %arg4[%c0_12, %c0_13, %c0_14] : memref<2x1x16xf32, #tpu.memory_space<vmem>>, vector<1x1x16xf32>
    %9 = vector.shape_cast %8 : vector<1x1x16xf32> to vector<1x16xf32>
    %cst = arith.constant 0.000000e+00 : f32
    %10 = vector.broadcast %cst : f32 to vector<1x16xf32>
    %11 = arith.cmpf ogt, %9, %10 : vector<1x16xf32>
    %cst_15 = arith.constant dense<0.000000e+00> : vector<1x16xf32>
    %12 = tpu.matmul %0, %3, %cst_15 {dimension_numbers = #tpu.dot_dimension_numbers<[1], [1], [0], [0], [0, 0, 1, 0], [], []>} : vector<1x32xbf16>, vector<16x32xbf16>, vector<1x16xf32> -> vector<1x16xf32>
    %cst_16 = arith.constant dense<0.000000e+00> : vector<1x16xf32>
    %13 = tpu.matmul %1, %5, %cst_16 {dimension_numbers = #tpu.dot_dimension_numbers<[1], [1], [0], [0], [0, 0, 1, 0], [], []>} : vector<1x32xbf16>, vector<16x32xbf16>, vector<1x16xf32> -> vector<1x16xf32>
    %cst_17 = arith.constant dense<0.000000e+00> : vector<1x16xf32>
    %14 = tpu.matmul %1, %7, %cst_17 {dimension_numbers = #tpu.dot_dimension_numbers<[1], [1], [0], [0], [0, 0, 1, 0], [], []>} : vector<1x32xbf16>, vector<16x32xbf16>, vector<1x16xf32> -> vector<1x16xf32>
    %15 = arith.addf %12, %13 : vector<1x16xf32>
    %cst_18 = arith.constant -1.000000e+30 : f32
    %16 = vector.broadcast %cst_18 : f32 to vector<1x16xf32>
    %17 = arith.select %11, %15, %16 : vector<1x16xi1>, vector<1x16xf32>
    %18 = arith.addf %12, %14 : vector<1x16xf32>
    %cst_19 = arith.constant -1.000000e+30 : f32
    %19 = vector.broadcast %cst_19 : f32 to vector<1x16xf32>
    %20 = arith.select %11, %18, %19 : vector<1x16xi1>, vector<1x16xf32>
    %c1 = arith.constant 1 : index
    %c0_20 = arith.constant 0 : index
    %c0_21 = arith.constant 0 : index
    %21 = vector.load %arg1[%c1, %c0_20, %c0_21] : memref<2x16x32xbf16, #tpu.memory_space<vmem>>, vector<1x16x32xbf16>
    %22 = vector.shape_cast %21 : vector<1x16x32xbf16> to vector<16x32xbf16>
    %c1_22 = arith.constant 1 : index
    %c0_23 = arith.constant 0 : index
    %c0_24 = arith.constant 0 : index
    %23 = vector.load %arg2[%c1_22, %c0_23, %c0_24] : memref<2x16x32xbf16, #tpu.memory_space<vmem>>, vector<1x16x32xbf16>
    %24 = vector.shape_cast %23 : vector<1x16x32xbf16> to vector<16x32xbf16>
    %c1_25 = arith.constant 1 : index
    %c0_26 = arith.constant 0 : index
    %c0_27 = arith.constant 0 : index
    %25 = vector.load %arg3[%c1_25, %c0_26, %c0_27] : memref<2x16x32xbf16, #tpu.memory_space<vmem>>, vector<1x16x32xbf16>
    %26 = vector.shape_cast %25 : vector<1x16x32xbf16> to vector<16x32xbf16>
    %c1_28 = arith.constant 1 : index
    %c0_29 = arith.constant 0 : index
    %c0_30 = arith.constant 0 : index
    %27 = vector.load %arg4[%c1_28, %c0_29, %c0_30] : memref<2x1x16xf32, #tpu.memory_space<vmem>>, vector<1x1x16xf32>
    %28 = vector.shape_cast %27 : vector<1x1x16xf32> to vector<1x16xf32>
    %cst_31 = arith.constant 0.000000e+00 : f32
    %29 = vector.broadcast %cst_31 : f32 to vector<1x16xf32>
    %30 = arith.cmpf ogt, %28, %29 : vector<1x16xf32>
    %cst_32 = arith.constant dense<0.000000e+00> : vector<1x16xf32>
    %31 = tpu.matmul %0, %22, %cst_32 {dimension_numbers = #tpu.dot_dimension_numbers<[1], [1], [0], [0], [0, 0, 1, 0], [], []>} : vector<1x32xbf16>, vector<16x32xbf16>, vector<1x16xf32> -> vector<1x16xf32>
    %cst_33 = arith.constant dense<0.000000e+00> : vector<1x16xf32>
    %32 = tpu.matmul %1, %24, %cst_33 {dimension_numbers = #tpu.dot_dimension_numbers<[1], [1], [0], [0], [0, 0, 1, 0], [], []>} : vector<1x32xbf16>, vector<16x32xbf16>, vector<1x16xf32> -> vector<1x16xf32>
    %cst_34 = arith.constant dense<0.000000e+00> : vector<1x16xf32>
    %33 = tpu.matmul %1, %26, %cst_34 {dimension_numbers = #tpu.dot_dimension_numbers<[1], [1], [0], [0], [0, 0, 1, 0], [], []>} : vector<1x32xbf16>, vector<16x32xbf16>, vector<1x16xf32> -> vector<1x16xf32>
    %34 = arith.addf %31, %32 : vector<1x16xf32>
    %cst_35 = arith.constant -1.000000e+30 : f32
    %35 = vector.broadcast %cst_35 : f32 to vector<1x16xf32>
    %36 = arith.select %30, %34, %35 : vector<1x16xi1>, vector<1x16xf32>
    %37 = arith.addf %31, %33 : vector<1x16xf32>
    %cst_36 = arith.constant -1.000000e+30 : f32
    %38 = vector.broadcast %cst_36 : f32 to vector<1x16xf32>
    %39 = arith.select %30, %37, %38 : vector<1x16xi1>, vector<1x16xf32>
    %40 = tpu.concatenate %17, %36, %20, %39 in 0 : vector<1x16xf32>, vector<1x16xf32>, vector<1x16xf32>, vector<1x16xf32> -> vector<4x16xf32>
    %cst_37 = arith.constant dense<0xFF800000> : vector<4xf32>
    %41 = vector.multi_reduction <maximumf>, %40, %cst_37 [1] : vector<4x16xf32> to vector<4xf32>
    %42 = vector.shape_cast %41 : vector<4xf32> to vector<4x1xf32>
    %43 = vector.broadcast %42 : vector<4x1xf32> to vector<4x16xf32>
    %44 = arith.subf %40, %43 : vector<4x16xf32>
    %45 = math.exp %44 : vector<4x16xf32>
    %cst_38 = arith.constant dense<0.000000e+00> : vector<4xf32>
    %46 = vector.multi_reduction <add>, %45, %cst_38 [1] : vector<4x16xf32> to vector<4xf32>
    %47 = vector.shape_cast %46 : vector<4xf32> to vector<4x1xf32>
    %48 = math.log %47 : vector<4x1xf32>
    %49 = vector.broadcast %48 : vector<4x1xf32> to vector<4x16xf32>
    %50 = arith.subf %44, %49 : vector<4x16xf32>
    %51 = vector.extract_strided_slice %50 {offsets = [0, 0], sizes = [1, 16], strides = [1, 1]} : vector<4x16xf32> to vector<1x16xf32>
    %c0_39 = arith.constant 0 : index
    %c0_40 = arith.constant 0 : index
    %c0_41 = arith.constant 0 : index
    %52 = vector.load %arg7[%c0_39, %c0_40, %c0_41] : memref<2x1x16xf32, #tpu.memory_space<vmem>>, vector<1x1x16xf32>
    %53 = vector.shape_cast %52 : vector<1x1x16xf32> to vector<1x16xf32>
    %54 = vector.shape_cast %51 : vector<1x16xf32> to vector<1x1x16xf32>
    tpu.vector_store %arg7[%c0_39, %c0_40, %c0_41], %54 {strides = array<i32>} : memref<2x1x16xf32, #tpu.memory_space<vmem>>, vector<1x1x16xf32>,
    %55 = vector.extract_strided_slice %50 {offsets = [2, 0], sizes = [1, 16], strides = [1, 1]} : vector<4x16xf32> to vector<1x16xf32>
    %c0_42 = arith.constant 0 : index
    %c0_43 = arith.constant 0 : index
    %c0_44 = arith.constant 0 : index
    %56 = vector.load %arg8[%c0_42, %c0_43, %c0_44] : memref<2x1x16xf32, #tpu.memory_space<vmem>>, vector<1x1x16xf32>
    %57 = vector.shape_cast %56 : vector<1x1x16xf32> to vector<1x16xf32>
    %58 = vector.shape_cast %55 : vector<1x16xf32> to vector<1x1x16xf32>
    tpu.vector_store %arg8[%c0_42, %c0_43, %c0_44], %58 {strides = array<i32>} : memref<2x1x16xf32, #tpu.memory_space<vmem>>, vector<1x1x16xf32>,
    %59 = vector.extract_strided_slice %50 {offsets = [1, 0], sizes = [1, 16], strides = [1, 1]} : vector<4x16xf32> to vector<1x16xf32>
    %c1_45 = arith.constant 1 : index
    %c0_46 = arith.constant 0 : index
    %c0_47 = arith.constant 0 : index
    %60 = vector.load %arg7[%c1_45, %c0_46, %c0_47] : memref<2x1x16xf32, #tpu.memory_space<vmem>>, vector<1x1x16xf32>
    %61 = vector.shape_cast %60 : vector<1x1x16xf32> to vector<1x16xf32>
    %62 = vector.shape_cast %59 : vector<1x16xf32> to vector<1x1x16xf32>
    tpu.vector_store %arg7[%c1_45, %c0_46, %c0_47], %62 {strides = array<i32>} : memref<2x1x16xf32, #tpu.memory_space<vmem>>, vector<1x1x16xf32>,
    %63 = vector.extract_strided_slice %50 {offsets = [3, 0], sizes = [1, 16], strides = [1, 1]} : vector<4x16xf32> to vector<1x16xf32>
    %c1_48 = arith.constant 1 : index
    %c0_49 = arith.constant 0 : index
    %c0_50 = arith.constant 0 : index
    %64 = vector.load %arg8[%c1_48, %c0_49, %c0_50] : memref<2x1x16xf32, #tpu.memory_space<vmem>>, vector<1x1x16xf32>
    %65 = vector.shape_cast %64 : vector<1x1x16xf32> to vector<1x16xf32>
    %66 = vector.shape_cast %63 : vector<1x16xf32> to vector<1x1x16xf32>
    tpu.vector_store %arg8[%c1_48, %c0_49, %c0_50], %66 {strides = array<i32>} : memref<2x1x16xf32, #tpu.memory_space<vmem>>, vector<1x1x16xf32>,
    return
  }
  func.func @transform_0(%arg0: i32) -> (i32, i32, i32) {
    %c0_i32 = arith.constant 0 : i32
    %c0_i32_0 = arith.constant 0 : i32
    %c0_i32_1 = arith.constant 0 : i32
    return %arg0, %c0_i32, %c0_i32_0 : i32, i32, i32
  }
  func.func @transform_1(%arg0: i32) -> (i32, i32, i32) {
    %c0_i32 = arith.constant 0 : i32
    %c0_i32_0 = arith.constant 0 : i32
    %c0_i32_1 = arith.constant 0 : i32
    return %arg0, %c0_i32, %c0_i32_0 : i32, i32, i32
  }
  func.func @transform_2(%arg0: i32) -> (i32, i32, i32) {
    %c0_i32 = arith.constant 0 : i32
    %c0_i32_0 = arith.constant 0 : i32
    %c0_i32_1 = arith.constant 0 : i32
    return %arg0, %c0_i32, %c0_i32_0 : i32, i32, i32
  }
  func.func @transform_3(%arg0: i32) -> (i32, i32, i32) {
    %c0_i32 = arith.constant 0 : i32
    %c0_i32_0 = arith.constant 0 : i32
    %c0_i32_1 = arith.constant 0 : i32
    return %arg0, %c0_i32, %c0_i32_0 : i32, i32, i32
  }
  func.func @transform_4(%arg0: i32) -> (i32, i32) {
    %c0_i32 = arith.constant 0 : i32
    %c0_i32_0 = arith.constant 0 : i32
    %c0_i32_1 = arith.constant 0 : i32
    return %c0_i32, %c0_i32_0 : i32, i32
  }
  func.func @transform_5(%arg0: i32) -> (i32, i32) {
    %c0_i32 = arith.constant 0 : i32
    %c0_i32_0 = arith.constant 0 : i32
    %c0_i32_1 = arith.constant 0 : i32
    return %c0_i32, %c0_i32_0 : i32, i32
  }
  func.func @transform_6(%arg0: i32) -> (i32, i32, i32) {
    %c0_i32 = arith.constant 0 : i32
    %c0_i32_0 = arith.constant 0 : i32
    %c0_i32_1 = arith.constant 0 : i32
    return %arg0, %c0_i32, %c0_i32_0 : i32, i32, i32
  }
  func.func @transform_7(%arg0: i32) -> (i32, i32, i32) {
    %c0_i32 = arith.constant 0 : i32
    %c0_i32_0 = arith.constant 0 : i32
    %c0_i32_1 = arith.constant 0 : i32
    return %arg0, %c0_i32, %c0_i32_0 : i32, i32, i32
  }
}

</mosaic_0001>

<bundles_post_ra>
// kernel: tpu_custom_call.1
= control target key start
LH: loop header
LB: loop body
LE: loop exit
PB: predicated region body
PF: predicated region fallthrough
CT: control target
= control target key end

     0   :  { %s1706_s0 = inlined_call_operand.hbm [shape: bf16[4,16,32], index: 0, kind: input, shape index: {}]   ;;  %s1707_s1 = inlined_call_operand.hbm [shape: bf16[4,16,32], index: 1, kind: input, shape index: {}]   ;;  %s1708_s2 = inlined_call_operand.hbm [shape: bf16[4,16,32], index: 2, kind: input, shape index: {}]   ;;  %s1709_s3 = inlined_call_operand.vmem [shape: f32[4,1,16], index: 3, kind: input, shape index: {}]   ;;  %s1710_s4 = inlined_call_operand.vmem [shape: bf16[1,32], index: 4, kind: input, shape index: {}]   ;;  %s1711_s5 = inlined_call_operand.vmem [shape: bf16[1,32], index: 5, kind: input, shape index: {}]   ;;  %s1712_s6 = inlined_call_operand.hbm [shape: f32[4,1,16], index: 6, kind: output, shape index: {0}]   ;;  %s1713_s7 = inlined_call_operand.hbm [shape: f32[4,1,16], index: 7, kind: output, shape index: {1}]  }
   0x1   :  { %1725 = sst [smem:[#allocation19_spill]] %s1706_s0 }
   0x2   :  { %1726 = sst [smem:[#allocation20_spill]] %s1707_s1 }
   0x3   :  { %13 = vsyncpa [#allocation3], 0 }
   0x4   :  { %15 = vsyncpa [#allocation3 + $0x1], 0 }
   0x5   :  { %16 = vsyncpa [#allocation6], 0 }
   0x6   :  { %18 = vsyncpa [#allocation6 + $0x1], 0 }
   0x7   :  { %19 = vsyncpa [#allocation4], 0 }
   0x8   :  { %21 = vsyncpa [#allocation4 + $0x1], 0 }
   0x9   :  { %22 = vsyncpa [#allocation10], 0 }
   0xa   :  { %24 = vsyncpa [#allocation10 + $0x1], 0  ;;  %s1396_s24 = smov 0   ;;  %s1398_s25 = smov 0  }
   0xb   :  { %s1400_s26 = smov 0   ;;  %s1402_s27 = smov 0  }
   0xc LB: > { %1727 = sst [smem:[#allocation15_spill]] %s1339_s26  ;;  %s1417_s28 = sadd.s32 4294967295, %s1343_s27   ;;  %s1343_s27 = sphi %s1402_s27, %s1749_s27   ;;  %s1339_s26 = sphi %s1400_s26, %s1751_s26   ;;  %s1335_s25 = sphi %s1398_s25, %s1753_s25   ;;  %s1331_s24 = sphi %s1396_s24, %s1752_s24  }
   0xd   : > { %1728 = sst [smem:[#allocation16_spill]] %s1343_s27  ;;  %s977_s29 = sadd.s32 4294967294, %s1343_s27  }
   0xe   : > { %s1421_s30 = sadd.s32 1, %s1343_s27   ;;  %s37_s8 = sadd.s32 1, %s1339_s26 }
   0xf   : > { %1729 = sst [smem:[#allocation17_spill]] %s1421_s30  ;;  %s34_s9 = ssub.s32 %s1343_s27, %s1421_s30 }
  0x10   : > { %p44_p0 = scmp.ne.s32.totalorder %s1339_s26, %s1335_s25  ;;  %p35_p1 = scmp.eq.s32.totalorder %s34_s9, 0 }
  0x11   : > { %p45_p2 = scmp.eq.s32.totalorder %s1343_s27, 0  ;;  %p50_p3 = scmp.ne.s32.totalorder %s1335_s25, %s1331_s24 }
  0x12   : > { %p51_p4 = scmp.eq.s32.totalorder %s1417_s28, 0  ;;  %p194_p7 = scmp.eq.s32.totalorder %s1417_s28, 1 }
  0x13   : > { %s1433_s10 = scalar_select %p35_p1, %s1339_s26, %s37_s8  }
  0x14   : > { %p46_p5 = por %p45_p2, %p44_p0  ;;  %p1435_p6 = por %p51_p4, %p50_p3 }
  0x15   : > { %1730 = sst [smem:[#allocation18_spill]] %s1433_s10  ;;  %p200_p8 = scmp.eq.s32.totalorder %s977_s29, 1 }
  0x16   : > { %s1731_s11 = scalar_select %p1435_p6, 1, 0 }
  0x17   : > { %p1111_p10 = scmp.lt.s32.totalorder %s1343_s27, 2  ;;  %p1442_p11 = por %p194_p7, %p44_p0 }
  0x18   : > { %p1446_p12 = por %p200_p8, %p50_p3  ;;  %s1714_s14 = sand.u32 1, %s1339_s26  }
  0x19   : > { %s1732_s12 = scalar_select %p1442_p11, 1, 0 }
  0x1a   : > { %s1733_s13 = scalar_select %p1446_p12, 1, 0 }
  0x1b   : > { %s1452_s15 = sshll.u32 %s1343_s27, 8  ;;  %s1456_s16 = sshll.u32 %s1714_s14, 4 }
  0x1c   : > { %p1458_p13 = pnand %p1111_p10, %p46_p5  ;;  %s274_s18 = sand.u32 1, %s1343_s27  }
  0x1d   : > { %s1735_s1 = sld [smem:[#allocation20_spill]]  ;;  %s278_s22 = scalar_lea.vmem [#allocation5], %s1456_s16 }
  0x1e   : > { %s286_s23 = sshll.u32 %s278_s22, 4  ;;  %s1473_s29 = scalar_lea.sflag [#allocation6], %s274_s18  ;;  %s1470_s23 = int_to_ptr.vmem [resolvable:$true] %s286_s23 }
  0x1f   : > { %p1479_p2 = pneg %p1458_p13 }
  0x23   : > { %s1467_s21 = scalar_lea.hbm %s1735_s1, %s1452_s15  ;;  %s1166_s22 = scalar_lea.hbm %s1735_s1, 512 }
  0x24   : > { %s1161_s8 = scalar_lea.hbm %s1467_s21, 256  ;;  %p1167_p5 = scmp.lt.s32.totalorder %s1467_s21, %s1735_s1 }
  0x25   : > { %p1162_p1 = scmp.ne.s32.totalorder %s1467_s21, %s1161_s8  ;;  %p1168_p7 = scmp.lt.s32.totalorder %s1166_s22, %s1161_s8 }
  0x27   : > { %p1164_p3 = pnand %p1479_p2, %p1162_p1  ;;  %p1169_p8 = por %p1168_p7, %p1167_p5 }
  0x29   : > { %p1165_p4 = pneg %p1164_p3 }
  0x2b   : > { %p1170_p10 = pnand %p1169_p8, %p1165_p4 }
  0x2d   : > { %1173 = shalt.err (!%p1170_p10)
}
  0x2e   : > { %s1174_s18 = scalar_lea.vmem %s1470_s23, 256  ;;  %s1345_s30 = smov [#allocation5]  }
  0x2f   : > { %p1175_p9 = scmp.ne.s32.totalorder %s1470_s23, %s1174_s18  ;;  %s1179_s19 = sshll.u32 %s1345_s30, 4  ;;  %s1180_s19 = int_to_ptr.vmem [resolvable:$false] %s1179_s19 }
  0x30   : > { %s1181_s20 = scalar_lea.vmem %s1180_s19, 512  ;;  %p1182_p0 = scmp.lt.s32.totalorder %s1470_s23, %s1180_s19 }
  0x31   : > { %p1177_p1 = pnand %p1175_p9, %p1479_p2  ;;  %p1183_p12 = scmp.lt.s32.totalorder %s1181_s20, %s1174_s18 }
  0x33   : > { %p1178_p3 = pneg %p1177_p1  ;;  %p1184_p11 = por %p1183_p12, %p1182_p0 }
  0x35   : > { %p1185_p6 = pnand %p1184_p11, %p1178_p3 }
  0x37   : > { %1188 = shalt.err (!%p1185_p6)
}
  0x38   : > { %s1719_s10 = smov 64   ;;  %s1721_s14 = smov 4  }
  0x39   : > { %1100 = dma.hbm_to_vmem [thread:$0]  (!%p1458_p13), %s1467_s21, 256, %s1470_s23, %s1473_s29, %s1719_s10, %s1719_s10, %s1721_s14  }
  0x3a   : > { %p324_p9 = scmp.lt.s32.totalorder %s1343_s27, 3  ;;  %s1737_s0 = sld [smem:[#allocation19_spill]] }
  0x3b   : > { %p1738_p6 = scmp.ge.s32.totalorder %s1343_s27, 1  ;;  %s256_s19 = scalar_lea.vmem [#allocation2], %s1456_s16 }
  0x3c   : > { %s264_s20 = sshll.u32 %s256_s19, 4  ;;  %s1740_s1 = sand.u32 1, %s1339_s26   ;;  %s1519_s20 = int_to_ptr.vmem [resolvable:$true] %s264_s20 }
  0x3d   : > { %p1514_p11 = pnand %p1738_p6, %p324_p9  ;;  %s253_s21 = scalar_lea.sflag [#allocation3], %s1740_s1 }
  0x3f   : > { %s1739_s18 = scalar_select %p1514_p11, 1, 0 }
  0x40   : > { %s1510_s22 = scalar_lea.hbm %s1737_s0, %s1452_s15  ;;  %s1194_s10 = scalar_lea.hbm %s1737_s0, 512 }
  0x41   : > { %s1189_s23 = scalar_lea.hbm %s1510_s22, 256  ;;  %p1195_p5 = scmp.lt.s32.totalorder %s1510_s22, %s1737_s0 }
  0x42   : > { %p1190_p12 = scmp.ne.s32.totalorder %s1510_s22, %s1189_s23  ;;  %p1196_p7 = scmp.lt.s32.totalorder %s1194_s10, %s1189_s23 }
  0x44   : > { %p1192_p0 = pnand %p1190_p12, %p1479_p2  ;;  %p1197_p8 = por %p1196_p7, %p1195_p5 }
  0x46   : > { %p1193_p4 = pneg %p1192_p0 }
  0x48   : > { %p1198_p10 = pnand %p1197_p8, %p1193_p4 }
  0x4a   : > { %1201 = shalt.err (!%p1198_p10)
}
  0x4b   : > { %s1202_s1 = scalar_lea.vmem %s1519_s20, 256  ;;  %s1348_s19 = smov [#allocation2]  }
  0x4c   : > { %p1203_p1 = scmp.ne.s32.totalorder %s1519_s20, %s1202_s1  ;;  %s1207_s30 = sshll.u32 %s1348_s19, 4  ;;  %s1208_s30 = int_to_ptr.vmem [resolvable:$false] %s1207_s30 }
  0x4d   : > { %s1209_s8 = scalar_lea.vmem %s1208_s30, 512  ;;  %p1210_p6 = scmp.lt.s32.totalorder %s1519_s20, %s1208_s30 }
  0x4e   : > { %p1205_p3 = pnand %p1203_p1, %p1479_p2  ;;  %p1211_p12 = scmp.lt.s32.totalorder %s1209_s8, %s1202_s1 }
  0x50   : > { %p1206_p9 = pneg %p1205_p3  ;;  %p1212_p0 = por %p1211_p12, %p1210_p6 }
  0x52   : > { %p1213_p11 = pnand %p1212_p0, %p1206_p9 }
  0x54   : > { %1216 = shalt.err (!%p1213_p11)
}
  0x55   : > { %s1741_s27 = smov 4   ;;  %s1742_s10 = smov 64  }
  0x56   : > { %1097 = dma.hbm_to_vmem [thread:$0]  (!%p1458_p13), %s1510_s22, 256, %s1519_s20, %s253_s21, %s1742_s10, %s1742_s10, %s1741_s27  }
  0x57   : > { %s1550_s19 = scalar_lea.hbm %s1708_s2, %s1452_s15  ;;  %s300_s1 = scalar_lea.vmem [#allocation7], %s1456_s16 }
  0x58   : > { %s308_s30 = sshll.u32 %s300_s1, 4  ;;  %s1217_s8 = scalar_lea.hbm %s1550_s19, 256  ;;  %s309_s30 = int_to_ptr.vmem [resolvable:$true] %s308_s30 }
  0x59   : > { %p1218_p11 = scmp.ne.s32.totalorder %s1550_s19, %s1217_s8  ;;  %s1222_s22 = scalar_lea.hbm %s1708_s2, 512 }
  0x5a   : > { %p1223_p7 = scmp.lt.s32.totalorder %s1550_s19, %s1708_s2  ;;  %p1224_p8 = scmp.lt.s32.totalorder %s1222_s22, %s1217_s8 }
  0x5b   : > { %p1220_p4 = pnand %p1218_p11, %p1479_p2 }
  0x5c   : > { %p1225_p10 = por %p1224_p8, %p1223_p7 }
  0x5d   : > { %p1221_p5 = pneg %p1220_p4 }
  0x5f   : > { %p1226_p1 = pnand %p1225_p10, %p1221_p5 }
  0x61   : > { %1229 = shalt.err (!%p1226_p1)
}
  0x62   : > { %s1230_s15 = scalar_lea.vmem %s309_s30, 256  ;;  %s1349_s16 = smov [#allocation7]  }
  0x63   : > { %p1231_p3 = scmp.ne.s32.totalorder %s309_s30, %s1230_s15  ;;  %s1235_s14 = sshll.u32 %s1349_s16, 4  ;;  %s1236_s14 = int_to_ptr.vmem [resolvable:$false] %s1235_s14 }
  0x64   : > { %s1237_s23 = scalar_lea.vmem %s1236_s14, 512  ;;  %p1238_p12 = scmp.lt.s32.totalorder %s309_s30, %s1236_s14 }
  0x65   : > { %p1233_p9 = pnand %p1231_p3, %p1479_p2  ;;  %p1239_p0 = scmp.lt.s32.totalorder %s1237_s23, %s1230_s15 }
  0x67   : > { %p1234_p6 = pneg %p1233_p9  ;;  %p1240_p11 = por %p1239_p0, %p1238_p12 }
  0x69   : > { %p1241_p4 = pnand %p1240_p11, %p1234_p6 }
  0x6b   : > { %1244 = shalt.err (!%p1241_p4)
}
  0x6c   : > { %1103 = dma.hbm_to_vmem [thread:$0]  (!%p1458_p13), %s1550_s19, 256, %s309_s30, %s1473_s29, %s1742_s10, %s1742_s10, %s1741_s27  }
  0x6d   : > { %p1743_p2 = scmp.ne.s32.totalorder %s1739_s18, 0 }
  0x6e   : > { %s1576_s0 = sand.u32 (!%p1743_p2), 1, %s1335_s25   ;;  %p1744_p5 = scmp.ne.s32.totalorder (!%p1743_p2), %s1731_s11, 0 }
  0x6f   : > { %328 = sbr.rel (%p1743_p2) target bundleno = 700 (0x2bc), region = 44  ;;  %s1579_s26 = sshll.u32 (!%p1743_p2), %s1576_s0, 4 }
  0x70   : > { %s331_s9 = scalar_lea.sflag (!%p1743_p2), [#allocation3], %s1576_s0  ;;  %s334_s17 = scalar_lea.vmem (!%p1743_p2), [#allocation2], %s1579_s26 }
  0x74   : > { %1314 = dma.done.wait (%p1744_p5), %s331_s9, 256  }
  0x75   : > { %1316 = vsyncadd (%p1744_p5), %s331_s9, 4294967040  ;;  %s339_s29 = sand.u32 1, %s1417_s28   ;;  %s343_s27 = scalar_lea.vmem [#allocation5], %s1579_s26 }
  0x76   : > { %s340_s18 = scalar_lea.sflag [#allocation6], %s339_s29 }
  0x77   : > { %1318 = dma.done.wait (%p1744_p5), %s340_s18, 512  }
  0x78   : > { %1320 = vsyncadd (%p1744_p5), %s340_s18, 4294966784  ;;  %v1350_v0 = vmov 0.0   ;;  %vm1351_vm0 = vmmov 0   ;;  %vm428_vm1 = vcmask 261120   ;;  %v1151_v1 = vld [vmem:[%s334_s17] sm:$0xff]   ;;  %s352_s10 = scalar_lea.vmem [#allocation7], %s1579_s26  ;;  %v739_v24 = vlaneseq }
  0x79   : > { %1048 = vmatprep.subr.bf16.mxu0 %v1350_v0  ;;  %1054 = vmatprep.subr.bf16.mxu1 %v1350_v0  ;;  %v1152_v2 = vld [vmem:[%s343_s27] sm:$0xff]   ;;  %v433_v3 = vsel %vm428_vm1, %v1151_v1, 0  ;;  %v1154_v6 = vld [vmem:[%s334_s17 + $0x8] sm:$0xff]   ;;  %s998_s8 = sshll.u32 %s1417_s28, 1  ;;  %vm756_vm4 = vcmask 1040384   ;;  %vm758_vm5 = vcmask 1041408  }
  0x7a   : > { %1050 = vmatprep.mubr.msk.bf16.mxu0 %vm1351_vm0, %v1350_v0  ;;  %1056 = vmatprep.mubr.msk.bf16.mxu1 %vm1351_vm0, %v1350_v0  ;;  %v484_v4 = vsel %vm428_vm1, %v1152_v2, 0  ;;  %v1153_v5 = vld [vmem:[%s352_s10] sm:$0xff]   ;;  %v596_v10 = vsel %vm428_vm1, %v1154_v6, 0  ;;  %v1155_v11 = vld [vmem:[%s343_s27 + $0x8] sm:$0xff]   ;;  %p406_p13 = scmp.lt.s32.totalorder %s998_s8, 3  ;;  %v740_v29 = vshrl.u32 %v739_v24, 7 }
  0x7b   : > { %1049 = vmatpush3.bf16.xpose.msra.mxu0 %v433_v3  ;;  %1055 = vmatpush3.bf16.xpose.msra.mxu1 %v484_v4  ;;  %v413_v7 = vld [vmem:[%s1710_s4] sm:$0x1]  ;;  %v532_v9 = vsel %vm428_vm1, %v1153_v5, 0  ;;  %v1156_v12 = vld [vmem:[%s352_s10 + $0x8] sm:$0xff]   ;;  %v644_v13 = vsel %vm428_vm1, %v1155_v11, 0  ;;  %vm760_vm6 = vcmask 1042432  }
  0x7c   : > { %1060 = vmatprep.subr.bf16.mxu0 %v1350_v0  ;;  %1066 = vmatprep.subr.bf16.mxu1 %v1350_v0  ;;  %v414_v8 = vld [vmem:[%s1711_s5] sm:$0x1]  ;;  %v692_v14 = vsel %vm428_vm1, %v1156_v12, 0  ;;  %s1755_s8 = smov (!%p406_p13, %s998_s8), 3  ;;  %v741_v38 = vsub.s32 0, %v740_v29  ;;  %vm762_vm7 = vcmask 125952  }
  0x7d   : > { %s408_s21 = scalar_lea.vmem %s1709_s3, %s1755_s8  ;;  %s996_s15 = sshll.u32 %s1576_s0, 1  ;;  %vm775_vm8 = vcmask 122880   ;;  %vm777_vm9 = vcmask 124930   ;;  %vm780_vm10 = vcmask 123905   ;;  %vm783_vm11 = vcmask 125955  }
  0x7e   : > { %v1011_v31 = vld [vmem:[%s408_s21 + $0x1] sm:$0x1]  ;;  %v421_v32 = vld [vmem:[%s408_s21] sm:$0x1]  ;;  %s1034_s16 = sshll.u32 %s1417_s28, 5  ;;  %s394_s14 = scalar_lea.vmem [#allocation8], %s996_s15 }
  0x7f   : > { %vm589_vm2 = vcmp.gt.f32.partialorder %v1011_v31, 0.0  ;;  %vm422_vm3 = vcmp.gt.f32.partialorder %v421_v32, 0.0  ;;  %s804_s23 = sshll.u32 %s394_s14, 4  ;;  %s1627_s17 = scalar_lea.hbm %s1712_s6, %s1034_s16  ;;  %s1629_s23 = int_to_ptr.vmem [resolvable:$true] %s804_s23 }
  0x80   : > { %s401_s29 = scalar_lea.vmem [#allocation9], %s996_s15  ;;  %s1634_s10 = scalar_lea.hbm %s1713_s7, %s1034_s16 }
  0x81   : > { %s820_s18 = sshll.u32 %s401_s29, 4  ;;  %s786_s11 = scalar_lea.sflag [#allocation4], %s1576_s0  ;;  %s1636_s18 = int_to_ptr.vmem [resolvable:$true] %s820_s18 }
  0x82   : > { %1051 = vmatmul.mubr.msk.bf16.vlgmr.msra.gmra.mxu0 %vm428_vm1, %v413_v7  ;;  %1057 = vmatmul.mubr.msk.bf16.vlgmr.msra.gmra.mxu1 %vm428_vm1, %v414_v8  ;;  %s1245_s19 = scalar_lea.vmem %s1629_s23, 32  ;;  %p1745_p8 = scmp.ne.s32.totalorder %s1732_s12, 0 }
  0x83   : > { %1061 = vmatpush3.bf16.xpose.msra.mxu0 %v532_v9  ;;  %1067 = vmatpush3.bf16.xpose.msra.mxu1 %v596_v10  ;;  %p1246_p7 = scmp.ne.s32.totalorder %s1629_s23, %s1245_s19  ;;  %s1352_s1 = smov [#allocation8]  }
  0x84   : > { %1062 = vmatprep.mubr.msk.bf16.mxu0 %vm1351_vm0, %v1350_v0  ;;  %1068 = vmatprep.mubr.msk.bf16.mxu1 %vm1351_vm0, %v1350_v0  ;;  %s1249_s30 = sshll.u32 %s1352_s1, 4  ;;  %s1250_s30 = int_to_ptr.vmem [resolvable:$false] %s1249_s30 }
  0x85   : > { %1072 = vmatprep.subr.bf16.mxu0 %v1350_v0  ;;  %1078 = vmatprep.subr.bf16.mxu1 %v1350_v0  ;;  %p1247_p10 = pnand %p1246_p7, %p1745_p8  ;;  %s1251_s8 = scalar_lea.vmem %s1250_s30, 64 }
  0x86   : > { %p1252_p3 = scmp.lt.s32.totalorder %s1629_s23, %s1250_s30  ;;  %p1253_p9 = scmp.lt.s32.totalorder %s1251_s8, %s1245_s19 }
  0x87   : > { %p1248_p1 = pneg %p1247_p10 }
  0x88   : > { %p1254_p6 = por %p1253_p9, %p1252_p3 }
  0x8a   : > { %1063 = vmatmul.mubr.msk.bf16.vlgmr.msra.gmra.mxu0 %vm428_vm1, %v414_v8  ;;  %1069 = vmatmul.mubr.msk.bf16.vlgmr.msra.gmra.mxu1 %vm428_vm1, %v413_v7  ;;  %p1255_p12 = pnand %p1254_p6, %p1248_p1 }
  0x8b   : > { %1073 = vmatpush3.bf16.xpose.msra.mxu0 %v644_v13  ;;  %1079 = vmatpush3.bf16.xpose.msra.mxu1 %v692_v14 }
  0x8c   : > { %1074 = vmatprep.mubr.msk.bf16.mxu0 %vm1351_vm0, %v1350_v0  ;;  %1080 = vmatprep.mubr.msk.bf16.mxu1 %vm1351_vm0, %v1350_v0 }
  0x92   : > { %1075 = vmatmul.mubr.msk.bf16.vlgmr.msra.gmra.mxu0 %vm428_vm1, %v414_v8  ;;  %1081 = vmatmul.mubr.msk.bf16.vlgmr.msra.gmra.mxu1 %vm428_vm1, %v414_v8 }
 0x142   : > { %v469_v15 = vpop.f32.mrf.mxu0  ;;  %v520_v16 = vpop.f32.mrf.mxu1 }
 0x143   : > { %v574_v37 = vadd.f32 %v520_v16, %v469_v15 }
 0x144   : > { %v1052_v17 = vpop.f32.mrf.mxu0  ;;  %v1058_v18 = vpop.f32.mrf.mxu1 }
 0x145   : > { %v575_v49 = vsel %vm422_vm3, %v574_v37, -1e+30 }
 0x146   : > { %v472_v19 = vpop.f32.mrf.mxu0  ;;  %v523_v20 = vpop.f32.mrf.mxu1 }
 0x148   : > { %v1053_v21 = vpop.f32.mrf.mxu0  ;;  %v1059_v22 = vpop.f32.mrf.mxu1 }
 0x14a   : > { %v568_v23 = vpop.f32.mrf.mxu0  ;;  %v632_v25 = vpop.f32.mrf.mxu1 }
 0x14b   : > { %v576_v33 = vadd.f32 %v568_v23, %v469_v15 }
 0x14c   : > { %v1064_v26 = vpop.f32.mrf.mxu0  ;;  %v1070_v27 = vpop.f32.mrf.mxu1 }
 0x14d   : > { %v577_v41 = vsel %vm422_vm3, %v576_v33, -1e+30 }
 0x14e   : > { %v571_v28 = vpop.f32.mrf.mxu0  ;;  %v635_v30 = vpop.f32.mrf.mxu1  ;;  %v748_v50 = vrot.slane %v577_v41, %v741_v38 }
 0x150   : > { %v1065_v34 = vpop.f32.mrf.mxu0  ;;  %v1071_v35 = vpop.f32.mrf.mxu1 }
 0x152   : > { %v680_v36 = vpop.f32.mrf.mxu0  ;;  %v728_v40 = vpop.f32.mrf.mxu1 }
 0x153   : > { %v734_v39 = vadd.f32 %v680_v36, %v632_v25  ;;  %v736_v42 = vadd.f32 %v728_v40, %v632_v25 }
 0x154   : > { %v1076_v43 = vpop.f32.mrf.mxu0  ;;  %v1082_v45 = vpop.f32.mrf.mxu1 }
 0x155   : > { %v735_v44 = vsel %vm589_vm2, %v734_v39, -1e+30  ;;  %v737_v47 = vsel %vm589_vm2, %v736_v42, -1e+30 }
 0x156   : > { %v742_v46 = vrot.slane %v735_v44, %v741_v38  ;;  %v683_v48 = vpop.f32.mrf.mxu0  ;;  %v731_v51 = vpop.f32.mrf.mxu1  ;;  %v754_v52 = vrot.slane %v737_v47, %v741_v38 }
 0x158   : > { %v1077_v53 = vpop.f32.mrf.mxu0  ;;  %v757_v54 = vsel %vm756_vm4, %v575_v49, %v742_v46  ;;  %v1083_v55 = vpop.f32.mrf.mxu1 }
 0x159   : > { %v759_v56 = vsel %vm758_vm5, %v757_v54, %v748_v50 }
 0x15a   : > { %v761_v57 = vsel %vm760_vm6, %v759_v56, %v754_v52 }
 0x15b   : > { %v763_v58 = vsel %vm762_vm7, %v761_v57, -inf }
 0x15c   : > { %764 = vmax.xlane.f32.xlu0 %v763_v58 }
 0x1e5   : > { %v765_v59 = vpop.xlane.xlu0 %764 }
 0x1e6   : > { %v766_v60 = vsub.f32 %v761_v57, %v765_v59 }
 0x1e8   : > { %v767_v61 = vmul.f32 1.442695, %v766_v60 }
 0x1ea   : > { %1157 = vpow2.f32 %v767_v61 }
 0x1f7   : > { %v1158_v62 = vpop.eup %1157 }
 0x1f8   : > { %v769_v63 = vsel %vm762_vm7, %v1158_v62, 0.0 }
 0x1f9   : > { %770 = vadd.xlane.f32.xlu0 %v769_v63 }
 0x282   : > { %v771_v0 = vpop.xlane.xlu0 %770 }
 0x283   : > { %1159 = vlog2.f32 %v771_v0 }
 0x290   : > { %v1160_v1 = vpop.eup %1159 }
 0x291   : > { %v773_v2 = vmul.f32 0.6931472, %v1160_v1 }
 0x293   : > { %v774_v3 = vsub.f32 %v766_v60, %v773_v2 }
 0x295   : > { %776 = vst.msk [vmem:[%s394_s14] sm:$0x1] %vm775_vm8, %v774_v3 }
 0x296   : > { %778 = vst.msk [vmem:[%s401_s29 - $0x2] sm:$0x4] %vm777_vm9, %v774_v3 }
 0x297   : > { %1018 = vst.msk [vmem:[%s394_s14] sm:$0x2] %vm780_vm10, %v774_v3 }
 0x298   : > { %1019 = vst.msk [vmem:[%s401_s29 - $0x2] sm:$0x8] %vm783_vm11, %v774_v3 }
 0x299   : > { %1258 = shalt.err (!%p1255_p12)
}
 0x29a   : > { %s1259_s22 = scalar_lea.hbm %s1627_s17, 32  ;;  %s1263_s15 = scalar_lea.hbm %s1712_s6, 64 }
 0x29b   : > { %p1260_p0 = scmp.ne.s32.totalorder %s1627_s17, %s1259_s22  ;;  %p1264_p2 = scmp.lt.s32.totalorder %s1627_s17, %s1712_s6 }
 0x29c   : > { %p1265_p5 = scmp.lt.s32.totalorder %s1263_s15, %s1259_s22 }
 0x29d   : > { %p1261_p11 = pnand %p1260_p0, %p1745_p8 }
 0x29e   : > { %p1266_p13 = por %p1265_p5, %p1264_p2 }
 0x29f   : > { %p1262_p4 = pneg %p1261_p11 }
 0x2a1   : > { %p1267_p7 = pnand %p1266_p13, %p1262_p4 }
 0x2a3   : > { %1270 = shalt.err (!%p1267_p7)
}
 0x2a4   : > { %s1353_s26 = smov 16   ;;  %s1354_s9 = smov 1  }
 0x2a5   : > { %1090 = dma.vmem_to_hbm [thread:$0]  (%p1745_p8), %s1629_s23, 32, %s1627_s17, %s786_s11, %s1353_s26, %s1353_s26, %s1354_s9  }
 0x2a6   : > { %s791_s29 = scalar_lea.sflag [#allocation10], %s1576_s0  ;;  %s1271_s28 = scalar_lea.vmem %s1636_s18, 32 }
 0x2a7   : > { %p1272_p10 = scmp.ne.s32.totalorder %s1636_s18, %s1271_s28  ;;  %s1355_s27 = smov [#allocation9]  }
 0x2a8   : > { %s1275_s19 = sshll.u32 %s1355_s27, 4  ;;  %s1276_s19 = int_to_ptr.vmem [resolvable:$false] %s1275_s19 }
 0x2a9   : > { %p1273_p1 = pnand %p1272_p10, %p1745_p8  ;;  %s1277_s1 = scalar_lea.vmem %s1276_s19, 64 }
 0x2aa   : > { %p1278_p9 = scmp.lt.s32.totalorder %s1636_s18, %s1276_s19  ;;  %p1279_p6 = scmp.lt.s32.totalorder %s1277_s1, %s1271_s28 }
 0x2ab   : > { %p1274_p3 = pneg %p1273_p1 }
 0x2ac   : > { %p1280_p12 = por %p1279_p6, %p1278_p9 }
 0x2ae   : > { %p1281_p0 = pnand %p1280_p12, %p1274_p3 }
 0x2b0   : > { %1284 = shalt.err (!%p1281_p0)
}
 0x2b1   : > { %s1285_s23 = scalar_lea.hbm %s1634_s10, 32  ;;  %s1289_s11 = scalar_lea.hbm %s1713_s7, 64 }
 0x2b2   : > { %p1286_p11 = scmp.ne.s32.totalorder %s1634_s10, %s1285_s23  ;;  %p1290_p5 = scmp.lt.s32.totalorder %s1634_s10, %s1713_s7 }
 0x2b3   : > { %p1291_p13 = scmp.lt.s32.totalorder %s1289_s11, %s1285_s23 }
 0x2b4   : > { %p1287_p4 = pnand %p1286_p11, %p1745_p8 }
 0x2b5   : > { %p1292_p7 = por %p1291_p13, %p1290_p5 }
 0x2b6   : > { %p1288_p2 = pneg %p1287_p4 }
 0x2b8   : > { %p1293_p10 = pnand %p1292_p7, %p1288_p2 }
 0x2ba   : > { %1296 = shalt.err (!%p1293_p10)
}
 0x2bb   : > { %1091 = dma.vmem_to_hbm [thread:$0]  (%p1745_p8), %s1636_s18, 32, %s1634_s10, %s791_s29, %s1353_s26, %s1353_s26, %s1354_s9  }
 0x2bc PF: > { %s1746_s22 = sld [smem:[#allocation16_spill]]  ;;  %s835_s20 = sand.u32 1, %s1331_s24  }
 0x2bd   : > { %p1747_p1 = scmp.ne.s32.totalorder %s1733_s13, 0  ;;  %s836_s21 = scalar_lea.sflag [#allocation4], %s835_s20 }
 0x2c2   : > { %p1748_p3 = scmp.ge.s32.totalorder %s1746_s22, 2 }
 0x2c4   : > { %p1105_p9 = pnand %p1748_p3, %p1747_p1 }
 0x2c6   : > { %p1106_p6 = pneg %p1105_p9 }
 0x2c8   : > { %1322 = dma.done.wait (%p1106_p6), %s836_s21, 32  }
 0x2c9   : > { %1324 = vsyncadd (%p1106_p6), %s836_s21, 4294967264  ;;  %s845_s15 = scalar_lea.sflag [#allocation10], %s835_s20 }
 0x2ca   : > { %1326 = dma.done.wait (%p1106_p6), %s845_s15, 32  }
 0x2cb   : > { %1328 = vsyncadd (%p1106_p6), %s845_s15, 4294967264  ;;  %s1749_s27 = sld [smem:[#allocation17_spill]]  ;;  %s1752_s24 = smov %s1335_s25 }
 0x2cc   : > { %s1750_s12 = sld [smem:[#allocation15_spill]] }
 0x2cd   : > { %s1751_s26 = sld [smem:[#allocation18_spill]] }
 0x2d1   : > { %p27_p8 = scmp.ge.s32.totalorder %s1749_s27, 4  }
 0x2d2   : > { %s1753_s25 = smov %s1750_s12 }
 0x2d3   :  { %29 = sbr.rel (!%p27_p8) target bundleno = 12 (0xc), region = 139 }
 0x2d8   :  { %850 = vsyncpa [#allocation3], 1 }
 0x2d9   :  { %852 = vsyncpa [#allocation3 + $0x1], 1 }
 0x2da   :  { %853 = vsyncpa [#allocation6], 1 }
 0x2db   :  { %855 = vsyncpa [#allocation6 + $0x1], 1 }
 0x2dc   :  { %856 = vsyncpa [#allocation4], 1 }
 0x2dd   :  { %858 = vsyncpa [#allocation4 + $0x1], 1 }
 0x2de   :  { %859 = vsyncpa [#allocation10], 1 }
 0x2df   :  { %861 = vsyncpa [#allocation10 + $0x1], 1 }

</bundles_post_ra>
